<compile_context>
chip_gen: v7x
topology: tpu7x:2x2x1
jax: 0.10.0
libtpu: 0.0.40
codegen_flags: <defaults>
</compile_context>

<pallas_src>
import functools

import jax
import jax.numpy as jnp
from jax.experimental import pallas as pl
from jax.experimental.pallas import tpu as pltpu

LANE = 128
# Wide lane widths to try (all multiples of 128); widest first.
_COLS_CANDIDATES = (4096, 2048, 1024, 512, 256, 128)
# ~2 MiB per tile: big enough to amortize per-step overhead, small enough that
# 2 arrays x 2 buffers x tile fits the smallest default scoped-VMEM (v5e 16 MiB).
_TARGET_TILE_BYTES = 2 * 1024 * 1024


def _pseudo_huber_kernel(x_ref, o_ref, *, delta, inv_delta):
    # Bandwidth-bound: compute in f32 regardless of input dtype, cast on store.
    x = x_ref[...].astype(jnp.float32)
    t = (x * inv_delta) ** 2
    o_ref[...] = (delta * (jnp.sqrt(t + 1.0) - 1.0)).astype(o_ref.dtype)


def _sublane_for(dtype):
    itemsize = jnp.dtype(dtype).itemsize
    return max(8, 32 // itemsize)  # f32 -> 8, bf16 -> 16, int8/fp8 -> 32


def pseudo_huber(x, delta=1.0):
    """Pseudo-Huber (as in the PyTorch module): delta * (sqrt((x/delta)^2 + 1) - 1)."""
    orig_shape = x.shape
    orig_dtype = x.dtype
    n = x.size
    itemsize = jnp.dtype(orig_dtype).itemsize
    sublane = _sublane_for(orig_dtype)

    # ---- choose a lane-dense (rows, cols) slab, avoiding padding if possible ----
    cols = None
    for c in _COLS_CANDIDATES:
        if n % (c * sublane) == 0:
            cols = c
            break

    x_flat = jnp.ravel(x)
    if cols is not None:
        rows = n // cols          # fast path: free reshape, no extra HBM passes
        padded = False
    else:
        cols = LANE               # ragged tail: pad once (rare path)
        rows = pl.cdiv(pl.cdiv(n, cols), sublane) * sublane
        x_flat = jnp.pad(x_flat, (0, rows * cols - n))
        padded = True
    x2d = x_flat.reshape(rows, cols)

    # ---- tile the row dim so each tile is ~_TARGET_TILE_BYTES ----
    tile_rows = max(sublane, _TARGET_TILE_BYTES // (cols * itemsize))
    tile_rows = (tile_rows // sublane) * sublane
    tile_rows = min(tile_rows, rows)
    while rows % tile_rows != 0:  # rows is a multiple of sublane, so this terminates
        tile_rows -= sublane
    grid = (rows // tile_rows,)

    kernel = functools.partial(
        _pseudo_huber_kernel, delta=float(delta), inv_delta=1.0 / float(delta))

    out2d = pl.pallas_call(
        kernel,
        out_shape=jax.ShapeDtypeStruct((rows, cols), orig_dtype),
        grid_spec=pltpu.PrefetchScalarGridSpec(
            num_scalar_prefetch=0,
            grid=grid,
            in_specs=[pl.BlockSpec((tile_rows, cols), lambda i: (i, 0))],
            out_specs=pl.BlockSpec((tile_rows, cols), lambda i: (i, 0)),
        ),
        compiler_params=pltpu.CompilerParams(
            dimension_semantics=("parallel",),
        ),
    )(x2d)

    if padded:
        return out2d.reshape(-1)[:n].reshape(orig_shape)
    return out2d.reshape(orig_shape)


def _ref(x, delta):
    xf = x.astype(jnp.float32)
    return (delta * (jnp.sqrt((xf / delta) ** 2 + 1.0) - 1.0)).astype(x.dtype)


if __name__ == "__main__":
    key = jax.random.PRNGKey(0)

    # NCHW feature map consistent with the classification module: B=2, C=4, H=W=16.
    x = jax.random.normal(key, (2, 4, 16, 16), dtype=jnp.float32)

    # delta != 1 to exercise the module's `delta * (...)` prefactor.
    for delta in (1.0, 2.0):
        out = jax.block_until_ready(pseudo_huber(x, delta=delta))
        ref = _ref(x, delta)
        assert out.shape == x.shape and out.dtype == x.dtype
        assert jnp.allclose(out, ref, atol=1e-6, rtol=1e-6)

    # bf16 input (kernel computes in f32 internally, casts on store).
    x_bf16 = x.astype(jnp.bfloat16)
    out_bf16 = jax.block_until_ready(pseudo_huber(x_bf16, delta=1.0))
    assert out_bf16.dtype == jnp.bfloat16
    assert jnp.allclose(out_bf16.astype(jnp.float32),
                        _ref(x_bf16, 1.0).astype(jnp.float32),
                        atol=1e-2, rtol=1e-2)

    # Ragged element count exercises the (rare) padded path.
    x_ragged = jax.random.normal(jax.random.PRNGKey(1), (3, 5, 7, 11), dtype=jnp.float32)
    out_ragged = jax.block_until_ready(pseudo_huber(x_ragged, delta=1.0))
    assert jnp.allclose(out_ragged, _ref(x_ragged, 1.0), atol=1e-6, rtol=1e-6)

    print("KERNEL_OK")
</pallas_src>

<mosaic_0001>
module attributes {stable_mosaic.version = 11 : i64} {
  func.func @_pseudo_huber_kernel(%arg0: i32, %arg1: memref<8x256xf32, #tpu.memory_space<vmem>>, %arg2: memref<8x256xf32, #tpu.memory_space<vmem>>) attributes {dimension_semantics = [#tpu.dimension_semantics<parallel>], iteration_bounds = array<i64: 1>, scalar_prefetch = 0 : i64, scratch_operands = 0 : i64, tpu.core_type = #tpu.core_type<tc>, window_params = [{transform_indices = @transform_0, window_bounds = array<i64: 8, 256>}, {transform_indices = @transform_1, window_bounds = array<i64: 8, 256>}]} {
    %c0 = arith.constant 0 : index
    %c0_0 = arith.constant 0 : index
    %0 = vector.load %arg1[%c0, %c0_0] : memref<8x256xf32, #tpu.memory_space<vmem>>, vector<8x256xf32>
    %cst = arith.constant 1.000000e+00 : f32
    %1 = vector.broadcast %cst : f32 to vector<8x256xf32>
    %2 = arith.mulf %0, %1 : vector<8x256xf32>
    %3 = arith.mulf %2, %2 : vector<8x256xf32>
    %cst_1 = arith.constant 1.000000e+00 : f32
    %4 = vector.broadcast %cst_1 : f32 to vector<8x256xf32>
    %5 = arith.addf %3, %4 : vector<8x256xf32>
    %6 = math.sqrt %5 : vector<8x256xf32>
    %cst_2 = arith.constant 1.000000e+00 : f32
    %7 = vector.broadcast %cst_2 : f32 to vector<8x256xf32>
    %8 = arith.subf %6, %7 : vector<8x256xf32>
    %cst_3 = arith.constant 1.000000e+00 : f32
    %9 = vector.broadcast %cst_3 : f32 to vector<8x256xf32>
    %10 = arith.mulf %9, %8 : vector<8x256xf32>
    %c0_4 = arith.constant 0 : index
    %c0_5 = arith.constant 0 : index
    %11 = vector.load %arg2[%c0_4, %c0_5] : memref<8x256xf32, #tpu.memory_space<vmem>>, vector<8x256xf32>
    tpu.vector_store %arg2[%c0_4, %c0_5], %10 {strides = array<i32>} : memref<8x256xf32, #tpu.memory_space<vmem>>, vector<8x256xf32>,
    return
  }
  func.func @transform_0(%arg0: i32) -> (i32, i32) {
    %c0_i32 = arith.constant 0 : i32
    %c0_i32_0 = arith.constant 0 : i32
    return %arg0, %c0_i32 : i32, i32
  }
  func.func @transform_1(%arg0: i32) -> (i32, i32) {
    %c0_i32 = arith.constant 0 : i32
    %c0_i32_0 = arith.constant 0 : i32
    return %arg0, %c0_i32 : i32, i32
  }
}

</mosaic_0001>

<bundles_post_ra>
// kernel: tpu_custom_call.1
= control target key start
LH: loop header
LB: loop body
LE: loop exit
PB: predicated region body
PF: predicated region fallthrough
CT: control target
= control target key end

     0   :  { %6 = vsyncpa [#allocation3], 0  ;;  %s152_s0 = inlined_call_operand.hbm [shape: f32[8,256], index: 0, kind: input, shape index: {}]   ;;  %s153_s1 = inlined_call_operand.hbm [shape: f32[8,256], index: 1, kind: output, shape index: {}]  }
   0x1   :  { %7 = vsyncpa [#allocation4], 0  ;;  %s116_s6 = smov [#allocation2]   ;;  %s68_s10 = scalar_lea.hbm %s152_s0, 256 }
   0x2   :  { %s14_s7 = sshll.u32 %s116_s6, 4  ;;  %p69_p0 = scmp.ne.s32.totalorder %s152_s0, %s68_s10  ;;  %s15_s7 = int_to_ptr.vmem [resolvable:$true] %s14_s7 }
   0x3   :  { %p72_p1 = scmp.lt.u32.totalorder %s68_s10, %s152_s0 }
   0x5   :  { %p74_p2 = pnand %p72_p1, %p69_p0 }
   0x7   :  { %77 = shalt.err (!%p74_p2)
}
   0x8   :  { %s78_s15 = scalar_lea.vmem %s15_s7, 256  ;;  %p83_p4 = scmp.lt.s32.totalorder %s15_s7, %s15_s7 }
   0x9   :  { %p79_p3 = scmp.ne.s32.totalorder %s15_s7, %s78_s15  ;;  %p84_p5 = scmp.lt.s32.totalorder %s78_s15, %s78_s15 }
   0xb   :  { %p85_p6 = por %p84_p5, %p83_p4 }
   0xd   :  { %p86_p7 = pnand %p85_p6, %p79_p3 }
   0xf   :  { %89 = shalt.err (!%p86_p7)
}
  0x10   :  { %17 = dma.hbm_to_vmem [thread:$0]  %s152_s0, 256, %s15_s7, [#allocation3]  }
  0x11   :  { %112 = dma.done.wait [#allocation3], 256  }
  0x12   :  { %113 = vsyncadd [#allocation3], 4294967040  ;;  %v21_v0 = vld [vmem:[#allocation2] sm:$0xff]  ;;  %v22_v1 = vld [vmem:[#allocation2 + $0x8] sm:$0xff]  ;;  %s117_s0 = smov [#allocation5]  }
  0x13   :  { %v23_v2 = vmul.f32 %v21_v0, %v21_v0  ;;  %v24_v3 = vmul.f32 %v22_v1, %v22_v1  ;;  %s51_s18 = sshll.u32 %s117_s0, 4  ;;  %s52_s18 = int_to_ptr.vmem [resolvable:$true] %s51_s18 }
  0x14   :  { %s90_s19 = scalar_lea.vmem %s52_s18, 256  ;;  %p95_p9 = scmp.lt.s32.totalorder %s52_s18, %s52_s18 }
  0x15   :  { %v25_v4 = vadd.f32 1.0, %v23_v2  ;;  %v26_v5 = vadd.f32 1.0, %v24_v3  ;;  %p91_p8 = scmp.ne.s32.totalorder %s52_s18, %s90_s19  ;;  %p96_p10 = scmp.lt.s32.totalorder %s90_s19, %s90_s19 }
  0x17   :  { %64 = vrsqrt.f32 %v25_v4  ;;  %vm29_vm0 = vcmp.eq.f32.partialorder %v25_v4, inf  ;;  %v32_v7 = vand.u32 2147483648, %v25_v4  ;;  %vm31_vm1 = vcmp.eq.f32.partialorder %v25_v4, 0.0  ;;  %p97_p11 = por %p96_p10, %p95_p9 }
  0x18   :  { %66 = vrsqrt.f32 %v26_v5  ;;  %vm36_vm2 = vcmp.eq.f32.partialorder %v26_v5, inf  ;;  %v39_v10 = vand.u32 2147483648, %v26_v5  ;;  %vm38_vm3 = vcmp.eq.f32.partialorder %v26_v5, 0.0 }
  0x19   :  { %p98_p12 = pnand %p97_p11, %p91_p8 }
  0x21   :  { %v65_v6 = vpop.eup %64 }
  0x22   :  { %v67_v8 = vpop.eup %66  ;;  %v28_v9 = vmul.f32 %v65_v6, %v25_v4 }
  0x23   :  { %v35_v11 = vmul.f32 %v67_v8, %v26_v5 }
  0x24   :  { %v30_v12 = vsel %vm29_vm0, %v25_v4, %v28_v9 }
  0x25   :  { %v33_v13 = vsel %vm31_vm1, %v32_v7, %v30_v12  ;;  %v37_v14 = vsel %vm36_vm2, %v26_v5, %v35_v11 }
  0x26   :  { %v60_v15 = vadd.f32 -1.0, %v33_v13  ;;  %v40_v16 = vsel %vm38_vm3, %v39_v10, %v37_v14 }
  0x27   :  { %v61_v17 = vadd.f32 -1.0, %v40_v16 }
  0x28   :  { %43 = vst [vmem:[#allocation5] sm:$0xff] %v60_v15 }
  0x29   :  { %44 = vst [vmem:[#allocation5 + $0x8] sm:$0xff] %v61_v17 }
  0x2a   :  { %101 = shalt.err (!%p98_p12)
}
  0x2b   :  { %s102_s22 = scalar_lea.hbm %s153_s1, 256 }
  0x2c   :  { %p103_p13 = scmp.ne.s32.totalorder %s153_s1, %s102_s22  ;;  %p106_p0 = scmp.lt.u32.totalorder %s102_s22, %s153_s1 }
  0x2e   :  { %p108_p1 = pnand %p106_p0, %p103_p13 }
  0x30   :  { %111 = shalt.err (!%p108_p1)
}
  0x31   :  { %54 = dma.vmem_to_hbm [thread:$0]  %s52_s18, 256, %s153_s1, [#allocation4]  }
  0x32   :  { %114 = dma.done.wait [#allocation4], 256  }
  0x33   :  { %115 = vsyncadd [#allocation4], 4294967040 }
  0x34   :  { %58 = vsyncpa [#allocation3], 1 }
  0x35   :  { %59 = vsyncpa [#allocation4], 1 }

</bundles_post_ra>
